<compile_context>
chip_gen: v5e
topology: v5e:2x2
jax: 0.10.0
libtpu: 0.0.40
codegen_flags: <defaults>
</compile_context>

<pallas_src>
import functools

import jax
import jax.numpy as jnp
from jax.experimental import pallas as pl
from jax.experimental.pallas import tpu as pltpu


def _pair(v):
    return tuple(v) if isinstance(v, (tuple, list)) else (v, v)


def _same_padding(in_hw, kernel_size, stride, dilation):
    """Replicates get_same_padding (non-transposed) -> per-dim (pad_lo, pad_hi)."""
    pads = []
    for size, k, s, d in zip(in_hw, kernel_size, stride, dilation):
        eff = (k - 1) * d + 1
        out = (size + s - 1) // s
        pad_total = max(0, (out - 1) * s + eff - size)
        lo = pad_total // 2                      # symmetric part (conv padding)
        hi = pad_total // 2 + (pad_total % 2)    # symmetric + unsym (F.pad) part
        pads.append((lo, hi))
    return pads


def conv2d_same_kernel(x_ref, w_ref, b_ref, o_ref, patch_ref, *,
                       ksize, dilation, wp, cin_p, lanes):
    """One batch element per grid step (stride-1 path).

    x_ref:     (1, Cin_p, Lx)        zero-padded, HW-flattened input
    w_ref:     (Cout, KH*KW*Cin_p)   weight-normalized weights (im2col order)
    b_ref:     (Cout, 1)             bias
    o_ref:     (1, Cout, Ho*Wp)      lane-dense output slab (cols >= Wo cropped by wrapper)
    patch_ref: VMEM (KH*KW*Cin_p, Ho*Wp) scratch for the fused im2col matrix
    """
    kh_n, kw_n = ksize
    dh, dw = dilation

    # Build the im2col patch: each tap is a pure lane shift of the flattened
    # input (contiguous slice), stored at an 8-aligned sublane offset.
    for t in range(kh_n * kw_n):
        kh, kw = divmod(t, kw_n)
        off = kh * dh * wp + kw * dw
        patch_ref[t * cin_p:(t + 1) * cin_p, :] = x_ref[0, :, off:off + lanes]

    # Single fused matmul: (Cout, K) @ (K, Ho*Wp) -> (Cout, Ho*Wp), f32 accumulate.
    acc = jnp.dot(w_ref[...], patch_ref[...], preferred_element_type=jnp.float32)
    acc = acc + b_ref[...]                       # (Cout, 1) broadcast along lanes
    o_ref[0] = acc.astype(o_ref.dtype)


def transposeable_normed_same_conv2d(x_nchw, weight_v, weight_g, bias,
                                     stride=(1, 1), dilation=(1, 1)):
    """Forward pass. x_nchw: (N, Cin, H, W). Returns (N, Cout, Ho, Wo)."""
    stride = _pair(stride)
    dilation = _pair(dilation)
    assert stride == (1, 1), "only the default stride=1 path is implemented"

    n, cin, h, w = x_nchw.shape
    cout, _, kh, kw = weight_v.shape

    # --- parameter setup (plain JAX glue): weight normalization, dim=0 ---
    v_norm = jnp.sqrt(jnp.sum(weight_v * weight_v, axis=(1, 2, 3), keepdims=True))
    weight = weight_g * weight_v / v_norm                      # (Cout, Cin, KH, KW)

    # --- "same" padding in NCHW (no layout transposes needed) ---
    pads = _same_padding((h, w), (kh, kw), stride, dilation)
    x_pad = jnp.pad(x_nchw, ((0, 0), (0, 0), pads[0], pads[1]))
    hp, wp = x_pad.shape[2], x_pad.shape[3]
    ho, wo = h, w                                              # stride 1

    # --- channel padding to a sublane multiple (aligned scratch writes) ---
    cin_p = -(-cin // 8) * 8

    # --- flatten HW onto the lane axis; pad flat length so all tap slices fit ---
    lanes = ho * wp                                            # compute-lane extent
    max_off = (kh - 1) * dilation[0] * wp + (kw - 1) * dilation[1]
    lx = -(-(max_off + lanes) // 128) * 128                    # lane-aligned, zero-padded
    x_flat = x_pad.reshape(n, cin, hp * wp)
    x_flat = jnp.pad(x_flat, ((0, 0), (0, cin_p - cin), (0, lx - hp * wp)))

    # --- weights as one 2D matrix (Cout, KH*KW*Cin_p), im2col row order ---
    w_t = jnp.transpose(weight, (0, 2, 3, 1))                  # (Cout, KH, KW, Cin)
    w_t = jnp.pad(w_t, ((0, 0), (0, 0), (0, 0), (0, cin_p - cin)))
    w2d = w_t.reshape(cout, kh * kw * cin_p)
    b2d = bias.reshape(cout, 1)

    kernel = functools.partial(conv2d_same_kernel,
                               ksize=(kh, kw), dilation=dilation,
                               wp=wp, cin_p=cin_p, lanes=lanes)

    out_flat = pl.pallas_call(
        kernel,
        out_shape=jax.ShapeDtypeStruct((n, cout, lanes), x_nchw.dtype),
        grid=(n,),
        in_specs=[
            pl.BlockSpec((1, cin_p, lx), lambda b: (b, 0, 0)),
            pl.BlockSpec((cout, kh * kw * cin_p), lambda b: (0, 0)),
            pl.BlockSpec((cout, 1), lambda b: (0, 0)),
        ],
        out_specs=pl.BlockSpec((1, cout, lanes), lambda b: (b, 0, 0)),
        scratch_shapes=[pltpu.VMEM((kh * kw * cin_p, lanes), jnp.float32)],
        compiler_params=pltpu.CompilerParams(dimension_semantics=("parallel",)),
    )(x_flat, w2d, b2d)

    # (N, Cout, Ho*Wp) -> (N, Cout, Ho, Wp) -> crop padded-width garbage columns.
    # Already NCHW; cheap XLA reshape+slice, no transpose.
    out = out_flat.reshape(n, cout, ho, wp)[:, :, :, :wo]
    return out


def _reference(x_nchw, weight_v, weight_g, bias, stride=(1, 1), dilation=(1, 1)):
    """Plain-JAX reference (lax.conv, full f32 precision) for validation."""
    v_norm = jnp.sqrt(jnp.sum(weight_v * weight_v, axis=(1, 2, 3), keepdims=True))
    weight = weight_g * weight_v / v_norm
    _, _, kh, kw = weight.shape
    h, w = x_nchw.shape[2], x_nchw.shape[3]
    pads = _same_padding((h, w), (kh, kw), stride, dilation)
    out = jax.lax.conv_general_dilated(
        x_nchw, weight,
        window_strides=stride, padding=pads, rhs_dilation=dilation,
        dimension_numbers=("NCHW", "OIHW", "NCHW"),
        precision=jax.lax.Precision.HIGHEST,
    )
    return out + bias[None, :, None, None]


if __name__ == "__main__":
    # Module config: in_shape=(4, 16, 16), out_channels=8, kernel_size=3, stride=1
    N, CIN, H, W = 2, 4, 16, 16
    COUT, KH, KW = 8, 3, 3

    key = jax.random.PRNGKey(0)
    k_v, k_b, k_x = jax.random.split(key, 3)

    # Deterministic synthetic params (weight_norm-style: g initialized to ||v||).
    weight_v = jax.random.normal(k_v, (COUT, CIN, KH, KW), jnp.float32) * 0.1
    weight_g = jnp.sqrt(jnp.sum(weight_v * weight_v, axis=(1, 2, 3), keepdims=True))
    bias = jax.random.normal(k_b, (COUT,), jnp.float32) * 0.01
    x = jax.random.normal(k_x, (N, CIN, H, W), jnp.float32)

    out = transposeable_normed_same_conv2d(x, weight_v, weight_g, bias)
    out = jax.block_until_ready(out)

    ref = jax.block_until_ready(_reference(x, weight_v, weight_g, bias))
    assert out.shape == (N, COUT, H, W), out.shape
    # Kernel uses default (bf16-pass) MXU precision; tolerance sized accordingly.
    max_err = float(jnp.max(jnp.abs(out - ref)))
    assert max_err < 3e-2, f"mismatch vs reference: {max_err}"

    print("KERNEL_OK")
</pallas_src>

<mosaic_0001>
module attributes {stable_mosaic.version = 11 : i64} {
  func.func @conv2d_same_kernel(%arg0: i32, %arg1: memref<1x8x384xf32, #tpu.memory_space<vmem>>, %arg2: memref<8x72xf32, #tpu.memory_space<vmem>>, %arg3: memref<8x1xf32, #tpu.memory_space<vmem>>, %arg4: memref<1x8x288xf32, #tpu.memory_space<vmem>>, %arg5: memref<72x288xf32, #tpu.memory_space<vmem>>) attributes {dimension_semantics = [#tpu.dimension_semantics<parallel>], iteration_bounds = array<i64: 2>, scalar_prefetch = 0 : i64, scratch_operands = 1 : i64, tpu.core_type = #tpu.core_type<tc>, window_params = [{transform_indices = @transform_0, window_bounds = array<i64: 1, 8, 384>}, {pipeline_mode = #tpu.pipeline_mode<synchronous>, transform_indices = @transform_1, window_bounds = array<i64: 8, 72>}, {pipeline_mode = #tpu.pipeline_mode<synchronous>, transform_indices = @transform_2, window_bounds = array<i64: 8, 1>}, {transform_indices = @transform_3, window_bounds = array<i64: 1, 8, 288>}]} {
    %c0 = arith.constant 0 : index
    %c0_0 = arith.constant 0 : index
    %c0_1 = arith.constant 0 : index
    %0 = vector.load %arg1[%c0, %c0_0, %c0_1] : memref<1x8x384xf32, #tpu.memory_space<vmem>>, vector<1x8x288xf32>
    %1 = vector.shape_cast %0 : vector<1x8x288xf32> to vector<8x288xf32>
    %c0_2 = arith.constant 0 : index
    %c0_3 = arith.constant 0 : index
    %2 = vector.load %arg5[%c0_2, %c0_3] : memref<72x288xf32, #tpu.memory_space<vmem>>, vector<8x288xf32>
    tpu.vector_store %arg5[%c0_2, %c0_3], %1 {strides = array<i32>} : memref<72x288xf32, #tpu.memory_space<vmem>>, vector<8x288xf32>,
    %c0_4 = arith.constant 0 : index
    %c0_5 = arith.constant 0 : index
    %c1 = arith.constant 1 : index
    %3 = vector.load %arg1[%c0_4, %c0_5, %c1] : memref<1x8x384xf32, #tpu.memory_space<vmem>>, vector<1x8x288xf32>
    %4 = vector.shape_cast %3 : vector<1x8x288xf32> to vector<8x288xf32>
    %c8 = arith.constant 8 : index
    %c0_6 = arith.constant 0 : index
    %5 = vector.load %arg5[%c8, %c0_6] : memref<72x288xf32, #tpu.memory_space<vmem>>, vector<8x288xf32>
    tpu.vector_store %arg5[%c8, %c0_6], %4 {strides = array<i32>} : memref<72x288xf32, #tpu.memory_space<vmem>>, vector<8x288xf32>,
    %c0_7 = arith.constant 0 : index
    %c0_8 = arith.constant 0 : index
    %c2 = arith.constant 2 : index
    %6 = vector.load %arg1[%c0_7, %c0_8, %c2] : memref<1x8x384xf32, #tpu.memory_space<vmem>>, vector<1x8x288xf32>
    %7 = vector.shape_cast %6 : vector<1x8x288xf32> to vector<8x288xf32>
    %c16 = arith.constant 16 : index
    %c0_9 = arith.constant 0 : index
    %8 = vector.load %arg5[%c16, %c0_9] : memref<72x288xf32, #tpu.memory_space<vmem>>, vector<8x288xf32>
    tpu.vector_store %arg5[%c16, %c0_9], %7 {strides = array<i32>} : memref<72x288xf32, #tpu.memory_space<vmem>>, vector<8x288xf32>,
    %c0_10 = arith.constant 0 : index
    %c0_11 = arith.constant 0 : index
    %c18 = arith.constant 18 : index
    %9 = vector.load %arg1[%c0_10, %c0_11, %c18] : memref<1x8x384xf32, #tpu.memory_space<vmem>>, vector<1x8x288xf32>
    %10 = vector.shape_cast %9 : vector<1x8x288xf32> to vector<8x288xf32>
    %c24 = arith.constant 24 : index
    %c0_12 = arith.constant 0 : index
    %11 = vector.load %arg5[%c24, %c0_12] : memref<72x288xf32, #tpu.memory_space<vmem>>, vector<8x288xf32>
    tpu.vector_store %arg5[%c24, %c0_12], %10 {strides = array<i32>} : memref<72x288xf32, #tpu.memory_space<vmem>>, vector<8x288xf32>,
    %c0_13 = arith.constant 0 : index
    %c0_14 = arith.constant 0 : index
    %c19 = arith.constant 19 : index
    %12 = vector.load %arg1[%c0_13, %c0_14, %c19] : memref<1x8x384xf32, #tpu.memory_space<vmem>>, vector<1x8x288xf32>
    %13 = vector.shape_cast %12 : vector<1x8x288xf32> to vector<8x288xf32>
    %c32 = arith.constant 32 : index
    %c0_15 = arith.constant 0 : index
    %14 = vector.load %arg5[%c32, %c0_15] : memref<72x288xf32, #tpu.memory_space<vmem>>, vector<8x288xf32>
    tpu.vector_store %arg5[%c32, %c0_15], %13 {strides = array<i32>} : memref<72x288xf32, #tpu.memory_space<vmem>>, vector<8x288xf32>,
    %c0_16 = arith.constant 0 : index
    %c0_17 = arith.constant 0 : index
    %c20 = arith.constant 20 : index
    %15 = vector.load %arg1[%c0_16, %c0_17, %c20] : memref<1x8x384xf32, #tpu.memory_space<vmem>>, vector<1x8x288xf32>
    %16 = vector.shape_cast %15 : vector<1x8x288xf32> to vector<8x288xf32>
    %c40 = arith.constant 40 : index
    %c0_18 = arith.constant 0 : index
    %17 = vector.load %arg5[%c40, %c0_18] : memref<72x288xf32, #tpu.memory_space<vmem>>, vector<8x288xf32>
    tpu.vector_store %arg5[%c40, %c0_18], %16 {strides = array<i32>} : memref<72x288xf32, #tpu.memory_space<vmem>>, vector<8x288xf32>,
    %c0_19 = arith.constant 0 : index
    %c0_20 = arith.constant 0 : index
    %c36 = arith.constant 36 : index
    %18 = vector.load %arg1[%c0_19, %c0_20, %c36] : memref<1x8x384xf32, #tpu.memory_space<vmem>>, vector<1x8x288xf32>
    %19 = vector.shape_cast %18 : vector<1x8x288xf32> to vector<8x288xf32>
    %c48 = arith.constant 48 : index
    %c0_21 = arith.constant 0 : index
    %20 = vector.load %arg5[%c48, %c0_21] : memref<72x288xf32, #tpu.memory_space<vmem>>, vector<8x288xf32>
    tpu.vector_store %arg5[%c48, %c0_21], %19 {strides = array<i32>} : memref<72x288xf32, #tpu.memory_space<vmem>>, vector<8x288xf32>,
    %c0_22 = arith.constant 0 : index
    %c0_23 = arith.constant 0 : index
    %c37 = arith.constant 37 : index
    %21 = vector.load %arg1[%c0_22, %c0_23, %c37] : memref<1x8x384xf32, #tpu.memory_space<vmem>>, vector<1x8x288xf32>
    %22 = vector.shape_cast %21 : vector<1x8x288xf32> to vector<8x288xf32>
    %c56 = arith.constant 56 : index
    %c0_24 = arith.constant 0 : index
    %23 = vector.load %arg5[%c56, %c0_24] : memref<72x288xf32, #tpu.memory_space<vmem>>, vector<8x288xf32>
    tpu.vector_store %arg5[%c56, %c0_24], %22 {strides = array<i32>} : memref<72x288xf32, #tpu.memory_space<vmem>>, vector<8x288xf32>,
    %c0_25 = arith.constant 0 : index
    %c0_26 = arith.constant 0 : index
    %c38 = arith.constant 38 : index
    %24 = vector.load %arg1[%c0_25, %c0_26, %c38] : memref<1x8x384xf32, #tpu.memory_space<vmem>>, vector<1x8x288xf32>
    %25 = vector.shape_cast %24 : vector<1x8x288xf32> to vector<8x288xf32>
    %c64 = arith.constant 64 : index
    %c0_27 = arith.constant 0 : index
    %26 = vector.load %arg5[%c64, %c0_27] : memref<72x288xf32, #tpu.memory_space<vmem>>, vector<8x288xf32>
    tpu.vector_store %arg5[%c64, %c0_27], %25 {strides = array<i32>} : memref<72x288xf32, #tpu.memory_space<vmem>>, vector<8x288xf32>,
    %c0_28 = arith.constant 0 : index
    %c0_29 = arith.constant 0 : index
    %27 = vector.load %arg2[%c0_28, %c0_29] : memref<8x72xf32, #tpu.memory_space<vmem>>, vector<8x72xf32>
    %c0_30 = arith.constant 0 : index
    %c0_31 = arith.constant 0 : index
    %28 = vector.load %arg5[%c0_30, %c0_31] : memref<72x288xf32, #tpu.memory_space<vmem>>, vector<72x288xf32>
    %cst = arith.constant dense<0.000000e+00> : vector<8x288xf32>
    %29 = tpu.matmul %27, %28, %cst {dimension_numbers = #tpu.dot_dimension_numbers<[1], [0], [0], [1], [0, 0, 1, 1], [], []>} : vector<8x72xf32>, vector<72x288xf32>, vector<8x288xf32> -> vector<8x288xf32>
    %c0_32 = arith.constant 0 : index
    %c0_33 = arith.constant 0 : index
    %30 = vector.load %arg3[%c0_32, %c0_33] : memref<8x1xf32, #tpu.memory_space<vmem>>, vector<8x1xf32>
    %31 = vector.broadcast %30 : vector<8x1xf32> to vector<8x288xf32>
    %32 = arith.addf %29, %31 : vector<8x288xf32>
    %c0_34 = arith.constant 0 : index
    %c0_35 = arith.constant 0 : index
    %c0_36 = arith.constant 0 : index
    %33 = vector.load %arg4[%c0_34, %c0_35, %c0_36] : memref<1x8x288xf32, #tpu.memory_space<vmem>>, vector<1x8x288xf32>
    %34 = vector.shape_cast %33 : vector<1x8x288xf32> to vector<8x288xf32>
    %35 = vector.shape_cast %32 : vector<8x288xf32> to vector<1x8x288xf32>
    tpu.vector_store %arg4[%c0_34, %c0_35, %c0_36], %35 {strides = array<i32>} : memref<1x8x288xf32, #tpu.memory_space<vmem>>, vector<1x8x288xf32>,
    return
  }
  func.func @transform_0(%arg0: i32) -> (i32, i32, i32) {
    %c0_i32 = arith.constant 0 : i32
    %c0_i32_0 = arith.constant 0 : i32
    %c0_i32_1 = arith.constant 0 : i32
    return %arg0, %c0_i32, %c0_i32_0 : i32, i32, i32
  }
  func.func @transform_1(%arg0: i32) -> (i32, i32) {
    %c0_i32 = arith.constant 0 : i32
    %c0_i32_0 = arith.constant 0 : i32
    %c0_i32_1 = arith.constant 0 : i32
    return %c0_i32, %c0_i32_0 : i32, i32
  }
  func.func @transform_2(%arg0: i32) -> (i32, i32) {
    %c0_i32 = arith.constant 0 : i32
    %c0_i32_0 = arith.constant 0 : i32
    %c0_i32_1 = arith.constant 0 : i32
    return %c0_i32, %c0_i32_0 : i32, i32
  }
  func.func @transform_3(%arg0: i32) -> (i32, i32, i32) {
    %c0_i32 = arith.constant 0 : i32
    %c0_i32_0 = arith.constant 0 : i32
    %c0_i32_1 = arith.constant 0 : i32
    return %arg0, %c0_i32, %c0_i32_0 : i32, i32, i32
  }
}

</mosaic_0001>

<bundles_post_ra>
// kernel: tpu_custom_call.1
= control target key start
LH: loop header
LB: loop body
LE: loop exit
PB: predicated region body
PF: predicated region fallthrough
CT: control target
= control target key end

     0   :  { %8 = vsyncpa [#allocation4], 0  ;;  %s930_s0 = inlined_call_operand.hbm [shape: f32[2,8,384], index: 0, kind: input, shape index: {}]   ;;  %s931_s1 = inlined_call_operand.vmem [shape: f32[8,72], index: 1, kind: input, shape index: {}]   ;;  %s932_s2 = inlined_call_operand.vmem [shape: f32[8,1], index: 2, kind: input, shape index: {}]   ;;  %s933_s3 = inlined_call_operand.hbm [shape: f32[2,8,288], index: 3, kind: output, shape index: {}]  }
   0x1   :  { %10 = vsyncpa [#allocation4 + $0x1], 0 }
   0x2   :  { %11 = vsyncpa [#allocation5], 0 }
   0x3   :  { %13 = vsyncpa [#allocation5 + $0x1], 0  ;;  %s750_s12 = smov 0   ;;  %s752_s13 = smov 0  }
   0x4   :  { %s754_s14 = smov 0   ;;  %s756_s15 = smov 0  }
   0x5 LB: > { %s771_s16 = sadd.s32 4294967295, %s719_s15   ;;  %s552_s17 = sadd.s32 4294967294, %s719_s15   ;;  %s719_s15 = sphi %s756_s15, %s941_s15   ;;  %s715_s14 = sphi %s754_s14, %s940_s14   ;;  %s711_s13 = sphi %s752_s13, %s939_s13   ;;  %s707_s12 = sphi %s750_s12, %s938_s12  }
   0x6   : > { %s775_s18 = sadd.s32 1, %s719_s15   ;;  %s26_s19 = sadd.s32 1, %s715_s14 }
   0x7   : > { %s23_s20 = ssub.s32 %s719_s15, %s775_s18  ;;  %p33_p0 = scmp.ne.s32.totalorder %s715_s14, %s711_s13 }
   0x8   : > { %p24_p1 = scmp.eq.s32.totalorder %s23_s20, 0  ;;  %p34_p2 = scmp.eq.s32.totalorder %s719_s15, 0 }
   0x9   : > { %p39_p3 = scmp.ne.s32.totalorder %s711_s13, %s707_s12  ;;  %p40_p4 = scmp.eq.s32.totalorder %s771_s16, 0 }
   0xa   : > { %s787_s21 = scalar_select %p24_p1, %s715_s14, %s26_s19  }
   0xb   : > { %p35_p5 = por %p34_p2, %p33_p0  ;;  %p789_p6 = por %p40_p4, %p39_p3 }
   0xc   : > { %p105_p7 = scmp.eq.s32.totalorder %s771_s16, 1  ;;  %p111_p8 = scmp.eq.s32.totalorder %s552_s17, 1 }
   0xd   : > { %p554_p9 = scmp.ge.s32.totalorder %s719_s15, 2  ;;  %p579_p10 = scmp.lt.s32.totalorder %s719_s15, 2 }
   0xe   : > { %p796_p11 = por %p105_p7, %p33_p0  ;;  %p800_p12 = por %p111_p8, %p39_p3 }
   0xf   : > { %s137_s25 = sand.u32 1, %s715_s14   ;;  %s564_s26 = smul.u32 24, %s719_s15 }
  0x10   : > { %s563_s27 = smul.u32 24, %s137_s25  ;;  %p809_p13 = pnand %p579_p10, %p35_p5 }
  0x11   : > { %s146_s30 = scalar_lea.hbm %s930_s0, %s564_s26  ;;  %s138_s8 = scalar_lea.sflag [#allocation4], %s137_s25 }
  0x12   : > { %s148_s5 = sshll.u32 %s146_s30, 4  ;;  %s141_s6 = scalar_lea.vmem [#allocation3], %s563_s27  ;;  %s149_s5 = int_to_ptr.hbm [resolvable:$true] %s148_s5 }
  0x13   : > { %s150_s7 = sshll.u32 %s141_s6, 4  ;;  %s623_s9 = sshra.s32 %s149_s5, 4  ;;  %s151_s7 = int_to_ptr.vmem [resolvable:$true] %s150_s7  ;;  %s624_s9 = int_to_ptr.hbm [resolvable:$true] %s623_s9 }
  0x14   : > { %s625_s10 = scalar_lea.hbm %s624_s9, 24  ;;  %p627_p1 = pneg %p809_p13 }
  0x15   : > { %p626_p0 = scmp.ne.s32.totalorder %s624_s9, %s625_s10  ;;  %s630_s19 = scalar_lea.hbm %s930_s0, 48 }
  0x16   : > { %p631_p4 = scmp.lt.s32.totalorder %s624_s9, %s930_s0  ;;  %p632_p5 = scmp.lt.s32.totalorder %s630_s19, %s625_s10 }
  0x17   : > { %p628_p2 = pnand %p627_p1, %p626_p0 }
  0x18   : > { %p633_p7 = por %p632_p5, %p631_p4 }
  0x19   : > { %p629_p3 = pneg %p628_p2 }
  0x1b   : > { %p634_p8 = pnand %p633_p7, %p629_p3 }
  0x1d   : > { %637 = shalt.err (!%p634_p8)
}
  0x1e   : > { %574 = dma.hbm_to_vmem [thread:$0]  (!%p809_p13), %s149_s5, 384, %s151_s7, %s138_s8  }
  0x1f   : > { %p556_p10 = scmp.ge.s32.totalorder %s719_s15, 1  ;;  %p155_p0 = scmp.lt.s32.totalorder %s719_s15, 3 }
  0x21   : > { %p156_p1 = pnand %p556_p10, %p155_p0 }
  0x22   : > { %s826_s25 = sand.u32 (!%p156_p1), 1, %s711_s13  }
  0x23   : > { %159 = sbr.rel (%p156_p1) target bundleno = 351 (0x15f), region = 32  ;;  %s162_s28 = scalar_lea.sflag (!%p156_p1), [#allocation4], %s826_s25 }
  0x24   : > { %s565_s27 = smul.u32 (!%p156_p1), 24, %s826_s25 }
  0x26   : > { %s165_s29 = scalar_lea.vmem (!%p156_p1), [#allocation3], %s565_s27 }
  0x28   : > { %698 = dma.done.wait (%p789_p6), %s162_s28, 384  }
  0x29   : > { %700 = vsyncadd (%p789_p6), %s162_s28, 4294966912  ;;  %v345_v0 = vld [vmem:[%s165_s29 + $0x10] sm:$0xff]  ;;  %v836_v1 = vld [vmem:[%s165_s29] sm:$0xff]  ;;  %s721_s30 = smov 90   ;;  %s722_s4 = smov 92   ;;  %vm194_vm0 = vcmask 261120  }
  0x2a   : > { %v838_v2 = vld [vmem:[%s165_s29 + $0x8] sm:$0xff]  ;;  %353 = vrot.lane.b32.xlu0 %v345_v0, %s721_s30  ;;  %311 = vrot.lane.b32.xlu1 %v345_v0, %s722_s4  ;;  %s723_s5 = smov 91   ;;  %s724_s6 = smov 108   ;;  %195 = vst.msk [vmem:[#allocation2 + $0x10] sm:$0xff] %vm194_vm0, %v345_v0  ;;  %vm355_vm1 = vcmask 736256   ;;  %vm334_vm2 = vcmask 744448  }
  0x2b   : > { %351 = vrot.lane.b32.xlu2 %v838_v2, %s721_s30  ;;  %s725_s22 = smov 109   ;;  %s726_s7 = smov 110   ;;  %vm313_vm3 = vcmask 752640   ;;  %v364_v33 = vld [vmem:[%s931_s1] sm:$0xff]  ;;  %vm398_vm4 = vcmask 588800   ;;  %vm292_vm5 = vcmask 883712  }
  0x2c   : > { %s727_s8 = smov 126   ;;  %s728_s9 = smov 127   ;;  %vm208_vm6 = vcmask 1039360   ;;  %v392_v34 = vld [vmem:[%s932_s2] sm:$0xff]  ;;  %v729_v37 = vmov 0   ;;  %vm271_vm7 = vcmask 891904  }
  0x2d   : > { %622 = vset.pattern.permute.xlu0 %v729_v37  ;;  %vm250_vm8 = vcmask 900096   ;;  %vm229_vm9 = vcmask 1031168   ;;  %s188_s20 = scalar_lea.vmem [#allocation6], %s565_s27  ;;  %s566_s26 = smul.u32 24, %s771_s16 }
  0x31   : > { %v367_v32 = vld [vmem:[#allocation2 + $0x10] sm:$0xff] }
  0x32   : > { %332 = vrot.lane.b32.xlu0 %v345_v0, %s723_s5  ;;  %349 = vrot.lane.b32.xlu1 %v836_v1, %s721_s30  ;;  %s477_s30 = scalar_lea.hbm %s933_s3, %s566_s26 }
  0x33   : > { %290 = vrot.lane.b32.xlu2 %v345_v0, %s724_s6 }
  0x3a   : > { %328 = vrot.lane.b32.xlu0 %v836_v1, %s723_s5  ;;  %330 = vrot.lane.b32.xlu1 %v838_v2, %s723_s5  ;;  %s481_s5 = sshll.u32 %s477_s30, 4  ;;  %s482_s5 = int_to_ptr.hbm [resolvable:$true] %s481_s5 }
  0x3b   : > { %269 = vrot.lane.b32.xlu2 %v345_v0, %s725_s22  ;;  %s667_s27 = sshra.s32 %s482_s5, 4  ;;  %s668_s27 = int_to_ptr.hbm [resolvable:$true] %s667_s27 }
  0x3c   : > { %p674_p3 = scmp.lt.s32.totalorder %s668_s27, %s933_s3 }
  0x42   : > { %309 = vrot.lane.b32.xlu1 %v838_v2, %s722_s4  ;;  %307 = vrot.lane.b32.xlu0 %v836_v1, %s722_s4  ;;  %s479_s4 = sshll.u32 %s188_s20, 4  ;;  %s480_s4 = int_to_ptr.vmem [resolvable:$true] %s479_s4 }
  0x43   : > { %248 = vrot.lane.b32.xlu2 %v345_v0, %s726_s7 }
  0x4a   : > { %288 = vrot.lane.b32.xlu1 %v838_v2, %s724_s6  ;;  %286 = vrot.lane.b32.xlu0 %v836_v1, %s724_s6  ;;  %s466_s6 = scalar_lea.sflag [#allocation5], %s826_s25 }
  0x4b   : > { %227 = vrot.lane.b32.xlu2 %v345_v0, %s727_s8 }
  0x52   : > { %267 = vrot.lane.b32.xlu1 %v838_v2, %s725_s22  ;;  %265 = vrot.lane.b32.xlu0 %v836_v1, %s725_s22  ;;  %s669_s22 = scalar_lea.hbm %s668_s27, 24 }
  0x53   : > { %206 = vrot.lane.b32.xlu2 %v345_v0, %s728_s9  ;;  %p670_p6 = scmp.ne.s32.totalorder %s668_s27, %s669_s22 }
  0x55   : > { %p671_p13 = pnand %p670_p6, %p796_p11 }
  0x57   : > { %p672_p2 = pneg %p671_p13 }
  0x5a   : > { %246 = vrot.lane.b32.xlu1 %v838_v2, %s726_s7  ;;  %244 = vrot.lane.b32.xlu0 %v836_v1, %s726_s7 }
  0x5b   : > { %223 = vrot.lane.b32.xlu2 %v836_v1, %s727_s8 }
  0x62   : > { %225 = vrot.lane.b32.xlu0 %v838_v2, %s727_s8  ;;  %202 = vrot.lane.b32.xlu1 %v836_v1, %s728_s9  ;;  %s673_s8 = scalar_lea.hbm %s933_s3, 48 }
  0x63   : > { %204 = vrot.lane.b32.xlu2 %v838_v2, %s728_s9  ;;  %p675_p4 = scmp.lt.s32.totalorder %s673_s8, %s669_s22 }
  0x65   : > { %p676_p5 = por %p675_p4, %p674_p3 }
  0x67   : > { %p677_p7 = pnand %p676_p5, %p672_p2 }
  0x6a   : > { %395 = vperm.xlu0 %622, %v392_v34  }
  0x85   : > { %v352_v3 = vpop.permute.xlu2 %351 }
  0x8d   : > { %v857_v4 = vpop.permute.xlu2 %290 }
  0x8e   : > { %300 = vst.msk [vmem:[#allocation2 + $0x88] sm:$0xff] %vm194_vm0, %v857_v4 }
  0x95   : > { %v861_v5 = vpop.permute.xlu2 %269  ;;  %v382_v22 = vld [vmem:[#allocation2 + $0x88] sm:$0xff] }
  0x96   : > { %279 = vst.msk [vmem:[#allocation2 + $0x70] sm:$0xff] %vm194_vm0, %v861_v5 }
  0x9c   : > { %v354_v6 = vpop.permute.xlu0 %353  ;;  %v312_v7 = vpop.permute.xlu1 %311 }
  0x9d   : > { %v357_v8 = vsel %vm355_vm1, %v352_v3, %v354_v6  ;;  %363 = vst.msk [vmem:[#allocation2 + $0xd0] sm:$0xff] %vm194_vm0, %v354_v6  ;;  %v866_v9 = vpop.permute.xlu2 %248  ;;  %v379_v23 = vld [vmem:[#allocation2 + $0x70] sm:$0xff] }
  0x9e   : > { %429 = vmatpush.msra.mxu1 %v357_v8  ;;  %321 = vst.msk [vmem:[#allocation2 + $0xa0] sm:$0xff] %vm194_vm0, %v312_v7 }
  0x9f   : > { %258 = vst.msk [vmem:[#allocation2 + $0x58] sm:$0xff] %vm194_vm0, %v866_v9 }
  0xa4   : > { %v333_v10 = vpop.permute.xlu0 %332  ;;  %v350_v11 = vpop.permute.xlu1 %349  ;;  %v391_v12 = vld [vmem:[#allocation2 + $0xd0] sm:$0xff] }
  0xa5   : > { %342 = vst.msk [vmem:[#allocation2 + $0xb8] sm:$0xff] %vm194_vm0, %v333_v10  ;;  %v356_v13 = vsel %vm355_vm1, %v350_v11, %v352_v3  ;;  %449 = vmatpush.msra.mxu2 %v391_v12  ;;  %v872_v14 = vpop.permute.xlu2 %227  ;;  %v385_v21 = vld [vmem:[#allocation2 + $0xa0] sm:$0xff] }
  0xa6   : > { %409 = vmatpush.msra.mxu0 %v356_v13  ;;  %237 = vst.msk [vmem:[#allocation2 + $0x40] sm:$0xff] %vm194_vm0, %v872_v14  ;;  %v376_v24 = vld [vmem:[#allocation2 + $0x58] sm:$0xff] }
  0xac   : > { %v329_v15 = vpop.permute.xlu0 %328  ;;  %v331_v16 = vpop.permute.xlu1 %330  ;;  %v388_v17 = vld [vmem:[#allocation2 + $0xb8] sm:$0xff] }
  0xad   : > { %v335_v18 = vsel %vm334_vm2, %v329_v15, %v331_v16  ;;  %v336_v19 = vsel %vm334_vm2, %v331_v16, %v333_v10  ;;  %450 = vmatpush.msra.mxu2 %v388_v17  ;;  %v207_v20 = vpop.permute.xlu2 %206  ;;  %v373_v27 = vld [vmem:[#allocation2 + $0x40] sm:$0xff] }
  0xae   : > { %410 = vmatpush.msra.mxu0 %v335_v18  ;;  %430 = vmatpush.msra.mxu1 %v336_v19  ;;  %216 = vst.msk [vmem:[#allocation2 + $0x28] sm:$0xff] %vm194_vm0, %v207_v20 }
  0xaf   : > { %451 = vmatpush.msra.mxu2 %v385_v21 }
  0xb1   : > { %452 = vmatpush.msra.mxu2 %v382_v22 }
  0xb3   : > { %453 = vmatpush.msra.mxu2 %v379_v23 }
  0xb4   : > { %v310_v25 = vpop.permute.xlu1 %309  ;;  %v308_v26 = vpop.permute.xlu0 %307 }
  0xb5   : > { %v315_v28 = vsel %vm313_vm3, %v310_v25, %v312_v7  ;;  %v314_v29 = vsel %vm313_vm3, %v308_v26, %v310_v25  ;;  %v224_v30 = vpop.permute.xlu2 %223  ;;  %454 = vmatpush.msra.mxu2 %v376_v24  ;;  %v370_v31 = vld [vmem:[#allocation2 + $0x28] sm:$0xff] }
  0xb6   : > { %411 = vmatpush.msra.mxu0 %v314_v29  ;;  %431 = vmatpush.msra.mxu1 %v315_v28 }
  0xb7   : > { %455 = vmatpush.msra.mxu2 %v373_v27 }
  0xb9   : > { %456 = vmatpush.msra.mxu2 %v370_v31 }
  0xbb   : > { %457 = vmatpush.msra.mxu2 %v367_v32 }
  0xbc   : > { %v289_v35 = vpop.permute.xlu1 %288  ;;  %v287_v36 = vpop.permute.xlu0 %286  ;;  %559 = vmatmul.msk.f32.vlgmr.msra.gmra.mxu2 %vm398_vm4, %v364_v33 }
  0xbd   : > { %v294_v38 = vsel %vm292_vm5, %v289_v35, %v857_v4  ;;  %v293_v39 = vsel %vm292_vm5, %v287_v36, %v289_v35  ;;  %v205_v40 = vpop.permute.xlu2 %204 }
  0xbe   : > { %412 = vmatpush.msra.mxu0 %v293_v39  ;;  %432 = vmatpush.msra.mxu1 %v294_v38  ;;  %v210_v41 = vsel %vm208_vm6, %v205_v40, %v207_v20 }
  0xc4   : > { %v268_v42 = vpop.permute.xlu1 %267  ;;  %v266_v43 = vpop.permute.xlu0 %265 }
  0xc5   : > { %v273_v44 = vsel %vm271_vm7, %v268_v42, %v861_v5  ;;  %v272_v45 = vsel %vm271_vm7, %v266_v43, %v268_v42 }
  0xc6   : > { %413 = vmatpush.msra.mxu0 %v272_v45  ;;  %433 = vmatpush.msra.mxu1 %v273_v44 }
  0xcc   : > { %v247_v46 = vpop.permute.xlu1 %246  ;;  %v245_v47 = vpop.permute.xlu0 %244 }
  0xcd   : > { %v252_v48 = vsel %vm250_vm8, %v247_v46, %v866_v9  ;;  %v251_v49 = vsel %vm250_vm8, %v245_v47, %v247_v46 }
  0xce   : > { %414 = vmatpush.msra.mxu0 %v251_v49  ;;  %434 = vmatpush.msra.mxu1 %v252_v48 }
  0xd4   : > { %v226_v50 = vpop.permute.xlu0 %225  ;;  %v203_v51 = vpop.permute.xlu1 %202 }
  0xd5   : > { %v230_v52 = vsel %vm229_vm9, %v224_v30, %v226_v50  ;;  %v231_v53 = vsel %vm229_vm9, %v226_v50, %v872_v14  ;;  %v209_v54 = vsel %vm208_vm6, %v203_v51, %v205_v40 }
  0xd6   : > { %415 = vmatpush.msra.mxu0 %v230_v52  ;;  %435 = vmatpush.msra.mxu1 %v231_v53 }
  0xd8   : > { %416 = vmatpush.msra.mxu0 %v209_v54  ;;  %436 = vmatpush.msra.mxu1 %v210_v41 }
  0xda   : > { %417 = vmatpush.msra.mxu0 %v836_v1  ;;  %437 = vmatpush.msra.mxu1 %v838_v2 }
  0xdb   : > { %557 = vmatmul.msk.f32.vlgmr.msra.gmra.mxu0 %vm398_vm4, %v364_v33  ;;  %558 = vmatmul.msk.f32.vlgmr.msra.gmra.mxu1 %vm398_vm4, %v364_v33 }
  0xdc   : > { %v396_v55 = vpop.permute.xlu0 %395 }
 0x13f   : > { %v459_v56 = vpop.f32.mrf.mxu2 }
 0x140   : > { %v460_v57 = vadd.f32 %v459_v56, %v396_v55 }
 0x142   : > { %464 = vst.msk [vmem:[%s188_s20 + $0x10] sm:$0xff] %vm194_vm0, %v460_v57 }
 0x158   : > { %v419_v58 = vpop.f32.mrf.mxu0  ;;  %v439_v59 = vpop.f32.mrf.mxu1 }
 0x159   : > { %v420_v60 = vadd.f32 %v419_v58, %v396_v55  ;;  %v440_v61 = vadd.f32 %v439_v59, %v396_v55 }
 0x15b   : > { %462 = vst [vmem:[%s188_s20] sm:$0xff] %v420_v60 }
 0x15c   : > { %463 = vst [vmem:[%s188_s20 + $0x8] sm:$0xff] %v440_v61 }
 0x15d   : > { %680 = shalt.err (!%p677_p7)
}
 0x15e   : > { %569 = dma.vmem_to_hbm [thread:$0]  (%p796_p11), %s480_s4, 384, %s482_s5, %s466_s6  }
 0x15f PF: > { %s493_s25 = sand.u32 1, %s707_s12   ;;  %p576_p8 = pnand %p554_p9, %p800_p12 }
 0x160   : > { %s494_s11 = scalar_lea.sflag [#allocation5], %s493_s25 }
 0x161   : > { %p577_p10 = pneg %p576_p8 }
 0x163   : > { %702 = dma.done.wait (%p577_p10), %s494_s11, 384  }
 0x164   : > { %704 = vsyncadd (%p577_p10), %s494_s11, 4294966912  ;;  %p16_p0 = scmp.ge.s32.totalorder %s775_s18, 4   ;;  %s938_s12 = smov %s711_s13 }
 0x165   : > { %s939_s13 = smov %s715_s14  ;;  %s940_s14 = smov %s787_s21 }
 0x166   : > { %s941_s15 = smov %s775_s18  ;;  %18 = sbr.rel (!%p16_p0) target bundleno = 5 (0x5), region = 77 }
 0x16b   :  { %500 = vsyncpa [#allocation4], 1 }
 0x16c   :  { %502 = vsyncpa [#allocation4 + $0x1], 1 }
 0x16d   :  { %503 = vsyncpa [#allocation5], 1 }
 0x16e   :  { %505 = vsyncpa [#allocation5 + $0x1], 1 }

</bundles_post_ra>
